<compile_context>
chip_gen: v5e
topology: v5e:2x2
jax: 0.10.0
libtpu: 0.0.40
codegen_flags: <defaults>
</compile_context>

<pallas_src>
import numpy as np

import jax
import jax.numpy as jnp
from jax.experimental import pallas as pl
from jax.experimental.pallas import tpu as pltpu

K = 1.0        # spring constant from the reference script
CHUNK = 128    # trajectory points per output row (lane-dense: 2*CHUNK = 256)
FWD_PAD = 128  # lane padding for the tiny forward kernel output


# --------------------------------------------------------------------------
# Kernel 1: exact SpringODE.forward(t, x)  (VPU only — no MXU)
# --------------------------------------------------------------------------
def _spring_forward_kernel(t_ref, x_ref, basis_ref, o_ref):
    # t is unused (autonomous system); kept for signature parity with the
    # PyTorch forward(t, x).
    del t_ref
    # dxdt = x0 * basis[0] + x1 * basis[1]; only the first 2 lanes are used,
    # the rest is zero padding so the store is a full-lane (unmasked) vst.
    o_ref[...] = x_ref[0] * basis_ref[0:1, :] + x_ref[1] * basis_ref[1:2, :]


def spring_ode_forward(t, x, k=K):
    """Pallas equivalent of SpringODE.forward(t, x) for x of shape (2,).

    NOTE: launch-overhead-bound (two scalar multiplies); kept as a kernel for
    API parity with the PyTorch module.
    """
    x1d = jnp.asarray(x, jnp.float32).reshape(2)
    t1d = jnp.asarray(t, jnp.float32).reshape(1)
    basis_np = np.zeros((2, FWD_PAD), dtype=np.float32)
    basis_np[0, 1] = -k   # x0 contributes -k to dxdt[1]
    basis_np[1, 0] = 1.0  # x1 contributes  1 to dxdt[0]
    out = pl.pallas_call(
        _spring_forward_kernel,
        out_shape=jax.ShapeDtypeStruct((1, FWD_PAD), jnp.float32),
        in_specs=[
            pl.BlockSpec(memory_space=pltpu.MemorySpace.SMEM),  # t  (scalar)
            pl.BlockSpec(memory_space=pltpu.MemorySpace.SMEM),  # x  (2,) scalars
            pl.BlockSpec(memory_space=pltpu.MemorySpace.VMEM),  # basis (2, 128)
        ],
        out_specs=pl.BlockSpec(memory_space=pltpu.MemorySpace.VMEM),
    )(t1d, x1d, jnp.asarray(basis_np))
    return out[0, :2]


# --------------------------------------------------------------------------
# Kernel 2: full RK4 trajectory in ONE grid-less invocation, sublane-dense.
# --------------------------------------------------------------------------
def _spring_traj_kernel(x0_ref, cpow_ref, s_ref, o_ref):
    x0 = x0_ref[0]
    x1 = x0_ref[1]
    # Per-chunk start states, vectorized over the sublane (chunk) axis:
    #   (a_c, b_c) = M^(c*CHUNK) @ x0        -> (num_chunks, 1) columns
    a = cpow_ref[:, 0:1] * x0 + cpow_ref[:, 1:2] * x1
    b = cpow_ref[:, 2:3] * x0 + cpow_ref[:, 3:4] * x1
    # Broadcast each S row exactly once (JAX does not CSE broadcast_in_dim).
    s0 = jnp.broadcast_to(s_ref[0:1, :], o_ref.shape)   # (num_chunks, 2*CHUNK)
    s1 = jnp.broadcast_to(s_ref[1:2, :], o_ref.shape)
    # One VPU combine produces the whole trajectory slab:
    #   o[c, 2j + r] = (M^(c*CHUNK + j) @ x0)[r]
    o_ref[...] = a * s0 + b * s1


def _build_tables(k, dt, chunk, num_chunks):
    """Host-side (float64) precompute of the RK4 step-matrix power tables."""
    a = np.array([[0.0, 1.0], [-k, 0.0]], dtype=np.float64)
    da = dt * a
    eye = np.eye(2, dtype=np.float64)
    da2 = da @ da
    # exact RK4 step matrix for the linear system dx/dt = A x
    m = eye + da + da2 / 2.0 + da2 @ da / 6.0 + da2 @ da2 / 24.0

    powers = np.empty((chunk, 2, 2), dtype=np.float64)
    p = eye.copy()
    for j in range(chunk):
        powers[j] = p
        p = p @ m
    m_chunk = p                                   # M^chunk

    chunk_pows = np.empty((num_chunks, 2, 2), dtype=np.float64)
    q = eye.copy()
    for c in range(num_chunks):
        chunk_pows[c] = q
        q = q @ m_chunk                           # M^(c*chunk)

    # S[s, 2j + r] = (M^j)[r, s]  so that  a*S[0] + b*S[1] packs states lane-densely
    s_mat = np.transpose(powers, (2, 0, 1)).reshape(2, 2 * chunk)
    # cpow[c] = [m00, m01, m10, m11] of M^(c*chunk)
    cpow = chunk_pows.reshape(num_chunks, 4)
    return (jnp.asarray(s_mat, jnp.float32),
            jnp.asarray(cpow, jnp.float32))


def spring_odeint_rk4(x0, t, k=K, chunk=CHUNK):
    """Integrate SpringODE on the uniform grid t (fixed-step RK4 semantics)."""
    # TODO(synk): torchdiffeq's default odeint is adaptive dopri5; this is
    # fixed-step RK4 on the provided uniform grid (requires concrete t).
    t_np = np.asarray(t, dtype=np.float64)
    n = int(t_np.shape[0])
    dt = float(t_np[1] - t_np[0])
    if not np.allclose(np.diff(t_np), dt, rtol=1e-3, atol=1e-5):
        raise ValueError("spring_odeint_rk4 requires a uniform time grid")

    num_chunks = -(-n // chunk)
    n_pad = num_chunks * chunk

    s_mat, chunk_pows = _build_tables(k, dt, chunk, num_chunks)
    x0f = jnp.asarray(x0, jnp.float32).reshape(2)

    # Single grid-less invocation: one (num_chunks, 2*chunk) sublane-dense
    # output block (8 KiB for n=1000) written by one unmasked DMA.
    traj2d = pl.pallas_call(
        _spring_traj_kernel,
        out_shape=jax.ShapeDtypeStruct((num_chunks, 2 * chunk), jnp.float32),
        in_specs=[
            pl.BlockSpec(memory_space=pltpu.MemorySpace.SMEM),  # x0  (2,) scalars
            pl.BlockSpec(memory_space=pltpu.MemorySpace.VMEM),  # M^(c*chunk) table
            pl.BlockSpec(memory_space=pltpu.MemorySpace.VMEM),  # S  (2, 2*chunk)
        ],
        out_specs=pl.BlockSpec(memory_space=pltpu.MemorySpace.VMEM),
    )(x0f, chunk_pows, s_mat)

    # Row-major reshape: element (c*chunk + j, r) == traj2d[c, 2j + r].
    return traj2d.reshape(n_pad, 2)[:n]


if __name__ == "__main__":
    key = jax.random.PRNGKey(0)
    k = K

    # --- check the forward kernel against the PyTorch semantics -------------
    x_rand = jax.random.normal(key, (2,), dtype=jnp.float32)
    t_scalar = jnp.float32(0.0)
    dxdt = jax.block_until_ready(spring_ode_forward(t_scalar, x_rand, k))
    dxdt_ref = jnp.stack([x_rand[1], -k * x_rand[0]])
    assert dxdt.shape == (2,) and dxdt.dtype == jnp.float32
    assert jnp.allclose(dxdt, dxdt_ref, atol=1e-6), (dxdt, dxdt_ref)

    # --- trajectory: x = odeint(model, x0, t) on t = linspace(0, 10, 1000) --
    t0, t1, n = 0.0, 10.0, 1000
    t = jnp.linspace(t0, t1, n, dtype=jnp.float32)
    x0 = jnp.array([0.0, 1.0], dtype=jnp.float32)
    traj = jax.block_until_ready(spring_odeint_rk4(x0, t, k))
    assert traj.shape == (n, 2) and traj.dtype == jnp.float32

    # analytic solution for k=1, x0=[0,1]:  x(t) = [sin t, cos t]
    analytic = jnp.stack([jnp.sin(t), jnp.cos(t)], axis=-1)
    max_err = jnp.max(jnp.abs(traj - analytic))
    assert max_err < 1e-3, max_err

    print("KERNEL_OK")
</pallas_src>

<mosaic_0001>
module attributes {stable_mosaic.version = 11 : i64} {
  func.func @_spring_forward_kernel(%arg0: memref<1xf32, #tpu.memory_space<smem>>, %arg1: memref<2xf32, #tpu.memory_space<smem>>, %arg2: memref<2x128xf32, #tpu.memory_space<vmem>>, %arg3: memref<1x128xf32, #tpu.memory_space<vmem>>) attributes {dimension_semantics = [], scalar_prefetch = 0 : i64, scratch_operands = 0 : i64, tpu.core_type = #tpu.core_type<tc>} {
    %c0 = arith.constant 0 : index
    %0 = memref.load %arg1[%c0] : memref<2xf32, #tpu.memory_space<smem>>
    %c0_0 = arith.constant 0 : index
    %c0_1 = arith.constant 0 : index
    %1 = vector.load %arg2[%c0_0, %c0_1] : memref<2x128xf32, #tpu.memory_space<vmem>>, vector<1x128xf32>
    %2 = vector.broadcast %0 : f32 to vector<1x128xf32>
    %3 = arith.mulf %2, %1 : vector<1x128xf32>
    %c1 = arith.constant 1 : index
    %4 = memref.load %arg1[%c1] : memref<2xf32, #tpu.memory_space<smem>>
    %c1_2 = arith.constant 1 : index
    %c0_3 = arith.constant 0 : index
    %5 = vector.load %arg2[%c1_2, %c0_3] : memref<2x128xf32, #tpu.memory_space<vmem>>, vector<1x128xf32>
    %6 = vector.broadcast %4 : f32 to vector<1x128xf32>
    %7 = arith.mulf %6, %5 : vector<1x128xf32>
    %8 = arith.addf %3, %7 : vector<1x128xf32>
    %c0_4 = arith.constant 0 : index
    %c0_5 = arith.constant 0 : index
    %9 = vector.load %arg3[%c0_4, %c0_5] : memref<1x128xf32, #tpu.memory_space<vmem>>, vector<1x128xf32>
    tpu.vector_store %arg3[%c0_4, %c0_5], %8 {strides = array<i32>} : memref<1x128xf32, #tpu.memory_space<vmem>>, vector<1x128xf32>,
    return
  }
}

</mosaic_0001>

<bundles_post_ra>
// kernel: tpu_custom_call.1
= control target key start
LH: loop header
LB: loop body
LE: loop exit
PB: predicated region body
PF: predicated region fallthrough
CT: control target
= control target key end

     0   :  { %9 = vsyncpa [#allocation5], 0  ;;  %s133_s0 = inlined_call_operand.<no memory space> [shape: f32[1], index: 0, kind: input, shape index: {}]   ;;  %s134_s1 = inlined_call_operand.hbm [shape: f32[2], index: 1, kind: input, shape index: {}]   ;;  %s135_s2 = inlined_call_operand.vmem [shape: f32[2,128], index: 2, kind: input, shape index: {}]   ;;  %s136_s3 = inlined_call_operand.hbm [shape: f32[1,128], index: 3, kind: output, shape index: {}]  }
   0x1   :  { %10 = vsyncpa [#allocation4], 0  ;;  %s18_s14 = sshll.u32 %s134_s1, 4  ;;  %s99_s15 = smov [#allocation3]   ;;  %s19_s14 = int_to_ptr.hbm [resolvable:$true] %s18_s14 }
   0x2   :  { %21 = dma.hbm_to_smem %s19_s14, 16, %s99_s15, [#allocation5]  }
   0x3   :  { %95 = dma.done.wait [#allocation5], 16  }
   0x4   :  { %96 = vsyncadd [#allocation5], 4294967280 }
   0x5   :  { %28 = sfence }
   0x6   :  { %s29_s0 = sld [smem:[#allocation3]]  ;;  %v30_v0 = vld [vmem:[%s135_s2] sm:$0x1]  ;;  %v34_v1 = vld [vmem:[%s135_s2 + $0x1] sm:$0x1]  ;;  %s100_s1 = smov [#allocation6]  }
   0x7   :  { %s56_s16 = sld [smem:[#allocation3 + $0x1]]  ;;  %s44_s21 = sshll.u32 %s100_s1, 4  ;;  %s45_s21 = int_to_ptr.vmem [resolvable:$true] %s44_s21 }
   0x8   :  { %s46_s24 = sshll.u32 %s136_s3, 4  ;;  %s47_s24 = int_to_ptr.hbm [resolvable:$true] %s46_s24 }
   0xc   :  { %v31_v2 = vstv %s29_s0 }
   0xd   :  { %v32_v3 = vmul.f32 %v31_v2, %v30_v0  ;;  %v35_v4 = vstv %s56_s16 }
   0xe   :  { %v36_v5 = vmul.f32 %v35_v4, %v34_v1 }
  0x10   :  { %v37_v6 = vadd.f32 %v36_v5, %v32_v3 }
  0x12   :  { %38 = vst [vmem:[#allocation6] sm:$0x1] %v37_v6 }
  0x13   :  { %49 = dma.vmem_to_hbm [thread:$0]  %s45_s21, 16, %s47_s24, [#allocation4]  }
  0x14   :  { %97 = dma.done.wait [#allocation4], 16  }
  0x15   :  { %98 = vsyncadd [#allocation4], 4294967280 }
  0x16   :  { %54 = vsyncpa [#allocation4], 1 }
  0x17   :  { %55 = vsyncpa [#allocation5], 1 }

</bundles_post_ra>
